<compile_context>
chip_gen: v6e
topology: v6e:2x2x1
jax: 0.10.0
libtpu: 0.0.40
codegen_flags: <defaults>
</compile_context>

<pallas_src>
import functools

import jax
import jax.numpy as jnp
from jax.experimental import pallas as pl
from jax.experimental.pallas import tpu as pltpu


# ---------------------------------------------------------------------------
# Fused kernel: one grid step == one batch row.
#   refs: ids [S,1] i32, mask [1,S] f32, emb [V,H] bf16, w1 [H,FF] bf16, b1 [1,FF] f32,
#         w2 [FF,H] bf16, b2 [1,H] f32, gamma [1,H] f32, beta [1,H] f32,
#         w_heads [H,Cp] bf16, b_heads [1,Cp] f32, out [1,Cp] f32
# ---------------------------------------------------------------------------
def _fused_kernel(ids_ref, mask_ref, emb_ref, w1_ref, b1_ref, w2_ref, b2_ref,
                  g_ref, beta_ref, wh_ref, bh_ref, o_ref, *, compression: bool):
    S = ids_ref.shape[0]
    V = emb_ref.shape[0]

    ids_col = ids_ref[...]                                       # [S, 1] int32
    mask_row = mask_ref[...]                                     # [1, S] float32

    # --- transformer: embedding gather as one-hot matmul on the MXU ------------
    vocab_iota = jax.lax.broadcasted_iota(jnp.int32, (S, V), 1)
    onehot = (ids_col == vocab_iota).astype(jnp.float32)         # [S, V]
    x = jnp.dot(onehot.astype(jnp.bfloat16), emb_ref[...],
                preferred_element_type=jnp.float32)              # [S, H] f32

    # --- transformer: FFN block + residual + LayerNorm (f32 elementwise) -------
    h = jnp.dot(x.astype(jnp.bfloat16), w1_ref[...],
                preferred_element_type=jnp.float32) + b1_ref[...]
    h = jax.nn.gelu(h)
    y = jnp.dot(h.astype(jnp.bfloat16), w2_ref[...],
                preferred_element_type=jnp.float32) + b2_ref[...] + x
    mu = jnp.mean(y, axis=-1, keepdims=True)
    var = jnp.mean(jnp.square(y - mu), axis=-1, keepdims=True)
    ctx = (y - mu) * jax.lax.rsqrt(var + 1e-5) * g_ref[...] + beta_ref[...]   # [S, H]

    # --- bracketer + generator + multitask masked pooling ----------------------
    # Folded into a single row of pooling weights w_row over the original tokens,
    # so the whole sequence reduction is one [1,S] @ [S,H] MXU contraction.
    # TODO(synk): real bracketer yields data-dependent chunk boundaries; fixed
    # pair-chunking is used here.
    if compression:
        Sh = S // 2
        row_i = jax.lax.broadcasted_iota(jnp.int32, (Sh, S), 0)
        col_i = jax.lax.broadcasted_iota(jnp.int32, (Sh, S), 1)
        pair_of_col = jax.lax.shift_right_logical(col_i, 1)      # token s -> pair s//2
        P = (pair_of_col == row_i).astype(jnp.float32)           # [Sh, S] pair selector
        Pm = P * mask_row                                        # mask-weighted pairs
        pair_cnt = jnp.sum(Pm, axis=1, keepdims=True)            # [Sh, 1] valid per pair
        inv_pair = pl.reciprocal(jnp.maximum(pair_cnt, 1.0), approx=True)
        cmask = jnp.minimum(pair_cnt, 1.0)                       # compact mask (0/1)
        # weight of original token s in the final pooled vector (before /denom)
        w_row = jnp.sum(Pm * (cmask * inv_pair), axis=0, keepdims=True)   # [1, S]
        denom = jnp.sum(cmask, axis=0, keepdims=True)            # [1, 1]
    else:
        w_row = mask_row                                         # plain masked mean
        denom = jnp.sum(mask_row, axis=1, keepdims=True)         # [1, 1]
    w_row = w_row * pl.reciprocal(jnp.maximum(denom, 1.0), approx=True)

    pooled = jnp.dot(w_row, ctx, preferred_element_type=jnp.float32)   # [1, H]

    # --- multitasknet: all task heads at once (concatenated, lane-padded) ------
    o_ref[...] = jnp.dot(pooled.astype(jnp.bfloat16), wh_ref[...],
                         preferred_element_type=jnp.float32) + bh_ref[...]


def _fused_forward(params, token_ids, padding_mask, compression):
    b, s = token_ids.shape
    v, hp = params["emb"].shape
    ffp = params["w1"].shape[1]
    cp = params["w_heads"].shape[1]

    ids3 = token_ids.reshape(b, s, 1).astype(jnp.int32)          # column orientation
    mask3 = padding_mask.reshape(b, 1, s).astype(jnp.float32)    # row orientation

    def resident(shp):
        return pl.BlockSpec(shp, lambda i: (0,) * len(shp))

    args = (ids3, mask3, params["emb"], params["w1"], params["b1"], params["w2"],
            params["b2"], params["gamma"], params["beta"],
            params["w_heads"], params["b_heads"])

    bytes_accessed = sum(int(a.size) * a.dtype.itemsize for a in args) + b * cp * 4
    flops = 2 * b * s * (v * hp + 2 * hp * ffp) + 2 * b * (s * hp + hp * cp)
    transcendentals = b * s * ffp  # gelu tanh

    out = pl.pallas_call(
        functools.partial(_fused_kernel, compression=compression),
        out_shape=jax.ShapeDtypeStruct((b, 1, cp), jnp.float32),
        grid=(b,),
        in_specs=[
            pl.BlockSpec((None, s, 1), lambda i: (i, 0, 0)),     # token ids (per row)
            pl.BlockSpec((None, 1, s), lambda i: (i, 0, 0)),     # padding mask (per row)
            resident((v, hp)),                                   # embedding table
            resident((hp, ffp)),                                 # w1
            resident((1, ffp)),                                  # b1
            resident((ffp, hp)),                                 # w2
            resident((1, hp)),                                   # b2
            resident((1, hp)),                                   # gamma
            resident((1, hp)),                                   # beta
            resident((hp, cp)),                                  # concat task head W
            resident((1, cp)),                                   # concat task head b
        ],
        out_specs=pl.BlockSpec((None, 1, cp), lambda i: (i, 0, 0)),
        compiler_params=pltpu.CompilerParams(
            dimension_semantics=("parallel",),                   # rows -> 2 TCs on v7x
            vmem_limit_bytes=32 * 1024 * 1024,                   # deliberate VMEM budget
        ),
        cost_estimate=pl.CostEstimate(
            flops=flops, transcendentals=transcendentals, bytes_accessed=bytes_accessed),
    )(*args)
    return out.reshape(b, cp)


# ---------------------------------------------------------------------------
# Parameter init (lane-dense dims; task heads concatenated + zero-padded to 128)
# ---------------------------------------------------------------------------
def init_params(key, vocab, hidden, ff, task_classes, classes_padded=128):
    assert hidden % 128 == 0 and ff % 128 == 0, "hidden/ff must be lane-dense (x128)"
    c_total = sum(task_classes.values())
    assert c_total <= classes_padded
    ks = jax.random.split(key, 3 + len(task_classes))
    params = {
        "emb": (jax.random.normal(ks[0], (vocab, hidden), jnp.float32) * 0.02
                ).astype(jnp.bfloat16),
        "w1": (jax.random.normal(ks[1], (hidden, ff), jnp.float32) * 0.02
               ).astype(jnp.bfloat16),
        "b1": jnp.zeros((1, ff), jnp.float32),
        "w2": (jax.random.normal(ks[2], (ff, hidden), jnp.float32) * 0.02
               ).astype(jnp.bfloat16),
        "b2": jnp.zeros((1, hidden), jnp.float32),
        "gamma": jnp.ones((1, hidden), jnp.float32),
        "beta": jnp.zeros((1, hidden), jnp.float32),
    }
    w_heads = jnp.zeros((hidden, classes_padded), jnp.float32)
    b_heads = jnp.zeros((1, classes_padded), jnp.float32)
    head_slices, off = {}, 0
    for i, (name, c) in enumerate(task_classes.items()):
        w_t = jax.random.normal(ks[3 + i], (hidden, c), jnp.float32) * 0.02
        w_heads = w_heads.at[:, off:off + c].set(w_t)
        head_slices[name] = (off, c)
        off += c
    params["w_heads"] = w_heads.astype(jnp.bfloat16)
    params["b_heads"] = b_heads
    return params, head_slices


# ---------------------------------------------------------------------------
# End-to-end forward, mirroring End2EndModel.forward
# ---------------------------------------------------------------------------
def end2end_forward(params, head_slices, token_ids, padding_mask, batch_slices,
                    compression=True, return_comp_rate=False):
    """token_ids: [B, S] int32, padding_mask: [B, S] float32 (1 = valid).
    TODO(synk): the original forward takes raw strings and tokenizes them; tokenized
    ids + mask are taken directly here (no Pallas equivalent for tokenization)."""
    assert compression in (True, False)
    assert batch_slices is not None
    b, s = token_ids.shape
    if compression:
        assert s % 2 == 0, "pair-chunking bracketer stand-in requires even seq length"

    logits_all = _fused_forward(params, token_ids, padding_mask, compression)  # [B, Cp]

    output = {}
    for task, sl in batch_slices.items():
        off, c = head_slices[task]
        output[task] = logits_all[sl, off:off + c]

    if return_comp_rate:
        if compression:
            compact_mask = padding_mask.reshape(b, s // 2, 2).max(axis=2)
            comp_rate = jnp.sum(compact_mask) / jnp.maximum(jnp.sum(padding_mask), 1.0)
        else:
            comp_rate = jnp.float32(1.0)
        return output, comp_rate
    return output


if __name__ == "__main__":
    B, S = 2, 16
    # lane-dense model dims (multiples of the 128-lane vreg width)
    V, H, FF = 128, 128, 256
    task_classes = {"taskA": 4, "taskB": 6}
    batch_slices = {"taskA": slice(0, 1), "taskB": slice(1, 2)}

    key = jax.random.PRNGKey(0)
    k_tok, k_par = jax.random.split(key)
    token_ids = jax.random.randint(k_tok, (B, S), 0, V, dtype=jnp.int32)
    # simple padding: first example uses all 16 tokens, second only 12
    padding_mask = jnp.stack(
        [jnp.ones((S,), jnp.float32),
         jnp.concatenate([jnp.ones((12,), jnp.float32), jnp.zeros((S - 12,), jnp.float32)])]
    )

    params, head_slices = init_params(k_par, V, H, FF, task_classes)

    out, comp_rate = end2end_forward(
        params, head_slices, token_ids, padding_mask, batch_slices,
        compression=True, return_comp_rate=True,
    )
    jax.block_until_ready(out)
    jax.block_until_ready(comp_rate)
    assert out["taskA"].shape == (1, 4)
    assert out["taskB"].shape == (1, 6)
    assert bool(jnp.all(jnp.isfinite(out["taskA"])))
    assert bool(jnp.all(jnp.isfinite(out["taskB"])))

    # exercise the no-compression path as well
    out_nc = end2end_forward(
        params, head_slices, token_ids, padding_mask, batch_slices,
        compression=False, return_comp_rate=False,
    )
    jax.block_until_ready(out_nc)
    assert out_nc["taskA"].shape == (1, 4)
    assert out_nc["taskB"].shape == (1, 6)

    print("KERNEL_OK")
</pallas_src>

<mosaic_0001>
module attributes {stable_mosaic.version = 11 : i64} {
  func.func @_fused_kernel(%arg0: i32, %arg1: memref<1x16x1xi32, #tpu.memory_space<vmem>>, %arg2: memref<1x1x16xf32, #tpu.memory_space<vmem>>, %arg3: memref<128x128xbf16, #tpu.memory_space<vmem>>, %arg4: memref<128x256xbf16, #tpu.memory_space<vmem>>, %arg5: memref<1x256xf32, #tpu.memory_space<vmem>>, %arg6: memref<256x128xbf16, #tpu.memory_space<vmem>>, %arg7: memref<1x128xf32, #tpu.memory_space<vmem>>, %arg8: memref<1x128xf32, #tpu.memory_space<vmem>>, %arg9: memref<1x128xf32, #tpu.memory_space<vmem>>, %arg10: memref<128x128xbf16, #tpu.memory_space<vmem>>, %arg11: memref<1x128xf32, #tpu.memory_space<vmem>>, %arg12: memref<1x1x128xf32, #tpu.memory_space<vmem>>) attributes {dimension_semantics = [#tpu.dimension_semantics<parallel>], iteration_bounds = array<i64: 2>, scalar_prefetch = 0 : i64, scratch_operands = 0 : i64, tpu.core_type = #tpu.core_type<tc>, window_params = [{transform_indices = @transform_0, window_bounds = array<i64: 1, 16, 1>}, {transform_indices = @transform_1, window_bounds = array<i64: 1, 1, 16>}, {pipeline_mode = #tpu.pipeline_mode<synchronous>, transform_indices = @transform_2, window_bounds = array<i64: 128, 128>}, {pipeline_mode = #tpu.pipeline_mode<synchronous>, transform_indices = @transform_3, window_bounds = array<i64: 128, 256>}, {pipeline_mode = #tpu.pipeline_mode<synchronous>, transform_indices = @transform_4, window_bounds = array<i64: 1, 256>}, {pipeline_mode = #tpu.pipeline_mode<synchronous>, transform_indices = @transform_5, window_bounds = array<i64: 256, 128>}, {pipeline_mode = #tpu.pipeline_mode<synchronous>, transform_indices = @transform_6, window_bounds = array<i64: 1, 128>}, {pipeline_mode = #tpu.pipeline_mode<synchronous>, transform_indices = @transform_7, window_bounds = array<i64: 1, 128>}, {pipeline_mode = #tpu.pipeline_mode<synchronous>, transform_indices = @transform_8, window_bounds = array<i64: 1, 128>}, {pipeline_mode = #tpu.pipeline_mode<synchronous>, transform_indices = @transform_9, window_bounds = array<i64: 128, 128>}, {pipeline_mode = #tpu.pipeline_mode<synchronous>, transform_indices = @transform_10, window_bounds = array<i64: 1, 128>}, {transform_indices = @transform_11, window_bounds = array<i64: 1, 1, 128>}]} {
    %c0 = arith.constant 0 : index
    %c0_0 = arith.constant 0 : index
    %c0_1 = arith.constant 0 : index
    %0 = vector.load %arg1[%c0, %c0_0, %c0_1] : memref<1x16x1xi32, #tpu.memory_space<vmem>>, vector<1x16x1xi32>
    %1 = vector.shape_cast %0 : vector<1x16x1xi32> to vector<16x1xi32>
    %c0_2 = arith.constant 0 : index
    %c0_3 = arith.constant 0 : index
    %c0_4 = arith.constant 0 : index
    %2 = vector.load %arg2[%c0_2, %c0_3, %c0_4] : memref<1x1x16xf32, #tpu.memory_space<vmem>>, vector<1x1x16xf32>
    %3 = vector.shape_cast %2 : vector<1x1x16xf32> to vector<1x16xf32>
    %4 = tpu.iota {dimensions = array<i32: 1>} : vector<16x128xi32>
    %5 = vector.broadcast %1 : vector<16x1xi32> to vector<16x128xi32>
    %6 = arith.cmpi eq, %5, %4 : vector<16x128xi32>
    %7 = arith.extui %6 : vector<16x128xi1> to vector<16x128xi32>
    %8 = arith.sitofp %7 : vector<16x128xi32> to vector<16x128xf32>
    %9 = arith.truncf %8 : vector<16x128xf32> to vector<16x128xbf16>
    %c0_5 = arith.constant 0 : index
    %c0_6 = arith.constant 0 : index
    %10 = vector.load %arg3[%c0_5, %c0_6] : memref<128x128xbf16, #tpu.memory_space<vmem>>, vector<128x128xbf16>
    %cst = arith.constant dense<0.000000e+00> : vector<16x128xf32>
    %11 = tpu.matmul %9, %10, %cst {dimension_numbers = #tpu.dot_dimension_numbers<[1], [0], [0], [1], [0, 0, 1, 1], [], []>} : vector<16x128xbf16>, vector<128x128xbf16>, vector<16x128xf32> -> vector<16x128xf32>
    %12 = arith.truncf %11 : vector<16x128xf32> to vector<16x128xbf16>
    %c0_7 = arith.constant 0 : index
    %c0_8 = arith.constant 0 : index
    %13 = vector.load %arg4[%c0_7, %c0_8] : memref<128x256xbf16, #tpu.memory_space<vmem>>, vector<128x256xbf16>
    %cst_9 = arith.constant dense<0.000000e+00> : vector<16x256xf32>
    %14 = tpu.matmul %12, %13, %cst_9 {dimension_numbers = #tpu.dot_dimension_numbers<[1], [0], [0], [1], [0, 0, 1, 1], [], []>} : vector<16x128xbf16>, vector<128x256xbf16>, vector<16x256xf32> -> vector<16x256xf32>
    %c0_10 = arith.constant 0 : index
    %c0_11 = arith.constant 0 : index
    %15 = vector.load %arg5[%c0_10, %c0_11] : memref<1x256xf32, #tpu.memory_space<vmem>>, vector<1x256xf32>
    %16 = vector.broadcast %15 : vector<1x256xf32> to vector<16x256xf32>
    %17 = arith.addf %14, %16 : vector<16x256xf32>
    %18 = arith.mulf %17, %17 : vector<16x256xf32>
    %19 = arith.mulf %17, %18 : vector<16x256xf32>
    %cst_12 = arith.constant 4.471500e-02 : f32
    %20 = vector.broadcast %cst_12 : f32 to vector<16x256xf32>
    %21 = arith.mulf %20, %19 : vector<16x256xf32>
    %22 = arith.addf %17, %21 : vector<16x256xf32>
    %cst_13 = arith.constant 0.797884583 : f32
    %23 = vector.broadcast %cst_13 : f32 to vector<16x256xf32>
    %24 = arith.mulf %23, %22 : vector<16x256xf32>
    %25 = math.tanh %24 : vector<16x256xf32>
    %cst_14 = arith.constant 1.000000e+00 : f32
    %26 = vector.broadcast %cst_14 : f32 to vector<16x256xf32>
    %27 = arith.addf %26, %25 : vector<16x256xf32>
    %cst_15 = arith.constant 5.000000e-01 : f32
    %28 = vector.broadcast %cst_15 : f32 to vector<16x256xf32>
    %29 = arith.mulf %28, %27 : vector<16x256xf32>
    %30 = arith.mulf %17, %29 : vector<16x256xf32>
    %31 = arith.truncf %30 : vector<16x256xf32> to vector<16x256xbf16>
    %c0_16 = arith.constant 0 : index
    %c0_17 = arith.constant 0 : index
    %32 = vector.load %arg6[%c0_16, %c0_17] : memref<256x128xbf16, #tpu.memory_space<vmem>>, vector<256x128xbf16>
    %cst_18 = arith.constant dense<0.000000e+00> : vector<16x128xf32>
    %33 = tpu.matmul %31, %32, %cst_18 {dimension_numbers = #tpu.dot_dimension_numbers<[1], [0], [0], [1], [0, 0, 1, 1], [], []>} : vector<16x256xbf16>, vector<256x128xbf16>, vector<16x128xf32> -> vector<16x128xf32>
    %c0_19 = arith.constant 0 : index
    %c0_20 = arith.constant 0 : index
    %34 = vector.load %arg7[%c0_19, %c0_20] : memref<1x128xf32, #tpu.memory_space<vmem>>, vector<1x128xf32>
    %35 = vector.broadcast %34 : vector<1x128xf32> to vector<16x128xf32>
    %36 = arith.addf %33, %35 : vector<16x128xf32>
    %37 = arith.addf %36, %11 : vector<16x128xf32>
    %cst_21 = arith.constant dense<0.000000e+00> : vector<16xf32>
    %38 = vector.multi_reduction <add>, %37, %cst_21 [1] : vector<16x128xf32> to vector<16xf32>
    %39 = vector.shape_cast %38 : vector<16xf32> to vector<16x1xf32>
    %cst_22 = arith.constant 1.280000e+02 : f32
    %40 = vector.broadcast %cst_22 : f32 to vector<16x1xf32>
    %41 = arith.divf %39, %40 : vector<16x1xf32>
    %42 = vector.broadcast %41 : vector<16x1xf32> to vector<16x128xf32>
    %43 = arith.subf %37, %42 : vector<16x128xf32>
    %44 = arith.mulf %43, %43 : vector<16x128xf32>
    %cst_23 = arith.constant dense<0.000000e+00> : vector<16xf32>
    %45 = vector.multi_reduction <add>, %44, %cst_23 [1] : vector<16x128xf32> to vector<16xf32>
    %46 = vector.shape_cast %45 : vector<16xf32> to vector<16x1xf32>
    %cst_24 = arith.constant 1.280000e+02 : f32
    %47 = vector.broadcast %cst_24 : f32 to vector<16x1xf32>
    %48 = arith.divf %46, %47 : vector<16x1xf32>
    %49 = vector.broadcast %41 : vector<16x1xf32> to vector<16x128xf32>
    %50 = arith.subf %37, %49 : vector<16x128xf32>
    %cst_25 = arith.constant 9.99999974E-6 : f32
    %51 = vector.broadcast %cst_25 : f32 to vector<16x1xf32>
    %52 = arith.addf %48, %51 : vector<16x1xf32>
    %53 = math.rsqrt %52 : vector<16x1xf32>
    %54 = vector.broadcast %53 : vector<16x1xf32> to vector<16x128xf32>
    %55 = arith.mulf %50, %54 : vector<16x128xf32>
    %c0_26 = arith.constant 0 : index
    %c0_27 = arith.constant 0 : index
    %56 = vector.load %arg8[%c0_26, %c0_27] : memref<1x128xf32, #tpu.memory_space<vmem>>, vector<1x128xf32>
    %57 = vector.broadcast %56 : vector<1x128xf32> to vector<16x128xf32>
    %58 = arith.mulf %55, %57 : vector<16x128xf32>
    %c0_28 = arith.constant 0 : index
    %c0_29 = arith.constant 0 : index
    %59 = vector.load %arg9[%c0_28, %c0_29] : memref<1x128xf32, #tpu.memory_space<vmem>>, vector<1x128xf32>
    %60 = vector.broadcast %59 : vector<1x128xf32> to vector<16x128xf32>
    %61 = arith.addf %58, %60 : vector<16x128xf32>
    %62 = tpu.iota {dimensions = array<i32: 0>} : vector<8x16xi32>
    %63 = tpu.iota {dimensions = array<i32: 1>} : vector<8x16xi32>
    %c1_i32 = arith.constant 1 : i32
    %64 = vector.broadcast %c1_i32 : i32 to vector<8x16xi32>
    %65 = arith.shrui %63, %64 : vector<8x16xi32>
    %66 = arith.cmpi eq, %65, %62 : vector<8x16xi32>
    %67 = arith.extui %66 : vector<8x16xi1> to vector<8x16xi32>
    %68 = arith.sitofp %67 : vector<8x16xi32> to vector<8x16xf32>
    %69 = vector.broadcast %3 : vector<1x16xf32> to vector<8x16xf32>
    %70 = arith.mulf %68, %69 : vector<8x16xf32>
    %cst_30 = arith.constant dense<0.000000e+00> : vector<8xf32>
    %71 = vector.multi_reduction <add>, %70, %cst_30 [1] : vector<8x16xf32> to vector<8xf32>
    %72 = vector.shape_cast %71 : vector<8xf32> to vector<8x1xf32>
    %cst_31 = arith.constant 1.000000e+00 : f32
    %73 = vector.broadcast %cst_31 : f32 to vector<8x1xf32>
    %74 = arith.maximumf %72, %73 : vector<8x1xf32>
    %75 = tpu.reciprocal %74 {approx = true} : vector<8x1xf32> -> vector<8x1xf32>
    %cst_32 = arith.constant 1.000000e+00 : f32
    %76 = vector.broadcast %cst_32 : f32 to vector<8x1xf32>
    %77 = arith.minimumf %72, %76 : vector<8x1xf32>
    %78 = arith.mulf %77, %75 : vector<8x1xf32>
    %79 = vector.broadcast %78 : vector<8x1xf32> to vector<8x16xf32>
    %80 = arith.mulf %70, %79 : vector<8x16xf32>
    %cst_33 = arith.constant dense<0.000000e+00> : vector<16xf32>
    %81 = vector.multi_reduction <add>, %80, %cst_33 [0] : vector<8x16xf32> to vector<16xf32>
    %82 = vector.shape_cast %81 : vector<16xf32> to vector<1x16xf32>
    %cst_34 = arith.constant dense<0.000000e+00> : vector<1xf32>
    %83 = vector.multi_reduction <add>, %77, %cst_34 [0] : vector<8x1xf32> to vector<1xf32>
    %84 = vector.shape_cast %83 : vector<1xf32> to vector<1x1xf32>
    %cst_35 = arith.constant 1.000000e+00 : f32
    %85 = vector.broadcast %cst_35 : f32 to vector<1x1xf32>
    %86 = arith.maximumf %84, %85 : vector<1x1xf32>
    %87 = tpu.reciprocal %86 {approx = true} : vector<1x1xf32> -> vector<1x1xf32>
    %88 = vector.broadcast %87 : vector<1x1xf32> to vector<1x16xf32>
    %89 = arith.mulf %82, %88 : vector<1x16xf32>
    %cst_36 = arith.constant dense<0.000000e+00> : vector<1x128xf32>
    %90 = tpu.matmul %89, %61, %cst_36 {dimension_numbers = #tpu.dot_dimension_numbers<[1], [0], [0], [1], [0, 0, 1, 1], [], []>} : vector<1x16xf32>, vector<16x128xf32>, vector<1x128xf32> -> vector<1x128xf32>
    %91 = arith.truncf %90 : vector<1x128xf32> to vector<1x128xbf16>
    %c0_37 = arith.constant 0 : index
    %c0_38 = arith.constant 0 : index
    %92 = vector.load %arg10[%c0_37, %c0_38] : memref<128x128xbf16, #tpu.memory_space<vmem>>, vector<128x128xbf16>
    %cst_39 = arith.constant dense<0.000000e+00> : vector<1x128xf32>
    %93 = tpu.matmul %91, %92, %cst_39 {dimension_numbers = #tpu.dot_dimension_numbers<[1], [0], [0], [1], [0, 0, 1, 1], [], []>} : vector<1x128xbf16>, vector<128x128xbf16>, vector<1x128xf32> -> vector<1x128xf32>
    %c0_40 = arith.constant 0 : index
    %c0_41 = arith.constant 0 : index
    %94 = vector.load %arg11[%c0_40, %c0_41] : memref<1x128xf32, #tpu.memory_space<vmem>>, vector<1x128xf32>
    %95 = arith.addf %93, %94 : vector<1x128xf32>
    %c0_42 = arith.constant 0 : index
    %c0_43 = arith.constant 0 : index
    %c0_44 = arith.constant 0 : index
    %96 = vector.load %arg12[%c0_42, %c0_43, %c0_44] : memref<1x1x128xf32, #tpu.memory_space<vmem>>, vector<1x1x128xf32>
    %97 = vector.shape_cast %96 : vector<1x1x128xf32> to vector<1x128xf32>
    %98 = vector.shape_cast %95 : vector<1x128xf32> to vector<1x1x128xf32>
    tpu.vector_store %arg12[%c0_42, %c0_43, %c0_44], %98 {strides = array<i32>} : memref<1x1x128xf32, #tpu.memory_space<vmem>>, vector<1x1x128xf32>,
    return
  }
  func.func @transform_0(%arg0: i32) -> (i32, i32, i32) {
    %c0_i32 = arith.constant 0 : i32
    %c0_i32_0 = arith.constant 0 : i32
    %c0_i32_1 = arith.constant 0 : i32
    return %arg0, %c0_i32, %c0_i32_0 : i32, i32, i32
  }
  func.func @transform_1(%arg0: i32) -> (i32, i32, i32) {
    %c0_i32 = arith.constant 0 : i32
    %c0_i32_0 = arith.constant 0 : i32
    %c0_i32_1 = arith.constant 0 : i32
    return %arg0, %c0_i32, %c0_i32_0 : i32, i32, i32
  }
  func.func @transform_2(%arg0: i32) -> (i32, i32) {
    %c0_i32 = arith.constant 0 : i32
    %c0_i32_0 = arith.constant 0 : i32
    %c0_i32_1 = arith.constant 0 : i32
    return %c0_i32, %c0_i32_0 : i32, i32
  }
  func.func @transform_3(%arg0: i32) -> (i32, i32) {
    %c0_i32 = arith.constant 0 : i32
    %c0_i32_0 = arith.constant 0 : i32
    %c0_i32_1 = arith.constant 0 : i32
    return %c0_i32, %c0_i32_0 : i32, i32
  }
  func.func @transform_4(%arg0: i32) -> (i32, i32) {
    %c0_i32 = arith.constant 0 : i32
    %c0_i32_0 = arith.constant 0 : i32
    %c0_i32_1 = arith.constant 0 : i32
    return %c0_i32, %c0_i32_0 : i32, i32
  }
  func.func @transform_5(%arg0: i32) -> (i32, i32) {
    %c0_i32 = arith.constant 0 : i32
    %c0_i32_0 = arith.constant 0 : i32
    %c0_i32_1 = arith.constant 0 : i32
    return %c0_i32, %c0_i32_0 : i32, i32
  }
  func.func @transform_6(%arg0: i32) -> (i32, i32) {
    %c0_i32 = arith.constant 0 : i32
    %c0_i32_0 = arith.constant 0 : i32
    %c0_i32_1 = arith.constant 0 : i32
    return %c0_i32, %c0_i32_0 : i32, i32
  }
  func.func @transform_7(%arg0: i32) -> (i32, i32) {
    %c0_i32 = arith.constant 0 : i32
    %c0_i32_0 = arith.constant 0 : i32
    %c0_i32_1 = arith.constant 0 : i32
    return %c0_i32, %c0_i32_0 : i32, i32
  }
  func.func @transform_8(%arg0: i32) -> (i32, i32) {
    %c0_i32 = arith.constant 0 : i32
    %c0_i32_0 = arith.constant 0 : i32
    %c0_i32_1 = arith.constant 0 : i32
    return %c0_i32, %c0_i32_0 : i32, i32
  }
  func.func @transform_9(%arg0: i32) -> (i32, i32) {
    %c0_i32 = arith.constant 0 : i32
    %c0_i32_0 = arith.constant 0 : i32
    %c0_i32_1 = arith.constant 0 : i32
    return %c0_i32, %c0_i32_0 : i32, i32
  }
  func.func @transform_10(%arg0: i32) -> (i32, i32) {
    %c0_i32 = arith.constant 0 : i32
    %c0_i32_0 = arith.constant 0 : i32
    %c0_i32_1 = arith.constant 0 : i32
    return %c0_i32, %c0_i32_0 : i32, i32
  }
  func.func @transform_11(%arg0: i32) -> (i32, i32, i32) {
    %c0_i32 = arith.constant 0 : i32
    %c0_i32_0 = arith.constant 0 : i32
    %c0_i32_1 = arith.constant 0 : i32
    return %arg0, %c0_i32, %c0_i32_0 : i32, i32, i32
  }
}

</mosaic_0001>

<bundles_post_ra>
// kernel: tpu_custom_call.1
= control target key start
LH: loop header
LB: loop body
LE: loop exit
PB: predicated region body
PF: predicated region fallthrough
CT: control target
= control target key end

     0   :  { %s2136_s0 = inlined_call_operand.vmem [shape: s32[2,16,1], index: 0, kind: input, shape index: {}]   ;;  %s2137_s1 = inlined_call_operand.vmem [shape: f32[2,1,16], index: 1, kind: input, shape index: {}]   ;;  %s2138_s2 = inlined_call_operand.hbm [shape: bf16[128,128], index: 2, kind: input, shape index: {}]   ;;  %s2139_s3 = inlined_call_operand.hbm [shape: bf16[128,256], index: 3, kind: input, shape index: {}]   ;;  %s2140_s4 = inlined_call_operand.vmem [shape: f32[1,256], index: 4, kind: input, shape index: {}]   ;;  %s2141_s5 = inlined_call_operand.hbm [shape: bf16[256,128], index: 5, kind: input, shape index: {}]   ;;  %s2142_s6 = inlined_call_operand.vmem [shape: f32[1,128], index: 6, kind: input, shape index: {}]   ;;  %s2143_s7 = inlined_call_operand.vmem [shape: f32[1,128], index: 7, kind: input, shape index: {}]   ;;  %s2144_s8 = inlined_call_operand.vmem [shape: f32[1,128], index: 8, kind: input, shape index: {}]   ;;  %s2145_s9 = inlined_call_operand.hbm [shape: bf16[128,128], index: 9, kind: input, shape index: {}]   ;;  %s2146_s10 = inlined_call_operand.vmem [shape: f32[1,128], index: 10, kind: input, shape index: {}]   ;;  %s2147_s11 = inlined_call_operand.hbm [shape: f32[2,1,128], index: 11, kind: output, shape index: {}]  }
   0x1   :  { %2149 = sst [smem:[#allocation16_spill]] %s2139_s3 }
   0x2   :  { %16 = vsyncpa [#allocation3], 0 }
   0x3   :  { %17 = vsyncpa [#allocation6], 0 }
   0x4   :  { %18 = vsyncpa [#allocation9], 0 }
   0x5   :  { %19 = vsyncpa [#allocation4], 0 }
   0x6   :  { %21 = vsyncpa [#allocation4 + $0x1], 0  ;;  %s1904_s17 = smov 0   ;;  %s1906_s18 = smov 0  }
   0x7   :  { %s1908_s19 = smov 0   ;;  %s1910_s20 = smov 0  }
   0x8 LB: > { %s1925_s21 = sadd.s32 4294967295, %s1829_s20   ;;  %s1326_s22 = sadd.s32 4294967294, %s1829_s20   ;;  %s1829_s20 = sphi %s1910_s20, %s2167_s20   ;;  %s1825_s19 = sphi %s1908_s19, %s2166_s19   ;;  %s1821_s18 = sphi %s1906_s18, %s2165_s18   ;;  %s1817_s17 = sphi %s1904_s17, %s2164_s17  }
   0x9   : > { %s1929_s23 = sadd.s32 1, %s1829_s20   ;;  %s275_s24 = sadd.s32 1, %s1825_s19 }
   0xa   : > { %s272_s25 = ssub.s32 %s1829_s20, %s1929_s23  ;;  %p285_p0 = scmp.ne.s32.totalorder %s1825_s19, %s1821_s18 }
   0xb   : > { %p273_p1 = scmp.eq.s32.totalorder %s272_s25, 0  ;;  %p286_p2 = scmp.eq.s32.totalorder %s1925_s21, 1 }
   0xc   : > { %p291_p3 = scmp.ne.s32.totalorder %s1821_s18, %s1817_s17  ;;  %p292_p4 = scmp.eq.s32.totalorder %s1326_s22, 1 }
   0xd   : > { %s1940_s26 = scalar_select %p273_p1, %s1825_s19, %s275_s24  }
   0xe   : > { %p1942_p5 = por %p286_p2, %p285_p0  ;;  %p1946_p6 = por %p292_p4, %p291_p3 }
   0xf   : > { %2150 = sst [smem:[#allocation15_spill]] %s1940_s26  ;;  %p1327_p7 = scmp.ge.s32.totalorder %s1829_s20, 1 }
  0x10   : > { %s2152_s28 = scalar_select %p1946_p6, 1, 0 }
  0x11   : > { %p299_p8 = scmp.lt.s32.totalorder %s1829_s20, 3  ;;  %p2148_p9 = scmp.eq.s32.totalorder %s1925_s21, 0 }
  0x12   : > { %s1831_s30 = smov [#allocation5]   ;;  %s1832_s14 = smov [#allocation2]  }
  0x13   : > { %p1953_p10 = pnand %p1327_p7, %p299_p8  ;;  %s324_s12 = sshll.u32 %s1831_s30, 4  ;;  %s325_s12 = int_to_ptr.vmem [resolvable:$true] %s324_s12 }
  0x14   : > { %s311_s15 = sshll.u32 %s1832_s14, 4  ;;  %s1664_s16 = scalar_lea.vmem %s325_s12, 2048  ;;  %s312_s15 = int_to_ptr.vmem [resolvable:$true] %s311_s15 }
  0x15   : > { %p1510_p11 = pneg %p1953_p10  ;;  %p1665_p0 = scmp.ne.s32.totalorder %s325_s12, %s1664_s16 }
  0x16   : > { %p1672_p3 = scmp.lt.s32.totalorder %s325_s12, %s325_s12  ;;  %p1673_p4 = scmp.lt.s32.totalorder %s1664_s16, %s1664_s16 }
  0x17   : > { %p1961_p12 = pnand %p2148_p9, %p1510_p11 }
  0x18   : > { %p1674_p7 = por %p1673_p4, %p1672_p3 }
  0x19   : > { %p1655_p13 = pneg %p1961_p12 }
  0x1b   : > { %p1667_p1 = pnand %p1665_p0, %p1655_p13 }
  0x1d   : > { %p1668_p2 = pneg %p1667_p1 }
  0x1f   : > { %p1675_p8 = pnand %p1674_p7, %p1668_p2 }
  0x21   : > { %1678 = shalt.err (!%p1675_p8)
}
  0x22   : > { %s1833_s22 = smov 128   ;;  %s1834_s24 = smov 8  }
  0x23   : > { %s2155_s3 = sld [smem:[#allocation16_spill]]  ;;  %s1690_s14 = scalar_lea.vmem %s312_s15, 1024 }
  0x24   : > { %p1691_p11 = scmp.ne.s32.totalorder %s312_s15, %s1690_s14  ;;  %p1698_p9 = scmp.lt.s32.totalorder %s312_s15, %s312_s15 }
  0x25   : > { %p1699_p6 = scmp.lt.s32.totalorder %s1690_s14, %s1690_s14 }
  0x26   : > { %p1693_p0 = pnand %p1691_p11, %p1655_p13 }
  0x27   : > { %p1700_p3 = por %p1699_p6, %p1698_p9 }
  0x28   : > { %p1694_p1 = pneg %p1693_p0 }
  0x29   : > { %1516 = dma.hbm_to_vmem [thread:$0]  (!%p1961_p12), %s2155_s3, 2048, %s325_s12, [#allocation6], %s1833_s22, %s1833_s22, %s1834_s24  }
  0x2a   : > { %p1701_p2 = pnand %p1700_p3, %p1694_p1 }
  0x2c   : > { %1704 = shalt.err (!%p1701_p2)
}
  0x2d   : > { %s1835_s16 = smov 64   ;;  %s1836_s26 = smov 4  }
  0x2e   : > { %1513 = dma.hbm_to_vmem [thread:$0]  (!%p1961_p12), %s2138_s2, 1024, %s312_s15, [#allocation3], %s1835_s16, %s1835_s16, %s1836_s26  }
  0x2f   : > { %s1837_s24 = smov [#allocation7]   ;;  %s1838_s30 = smov [#allocation8]  }
  0x30   : > { %s340_s25 = sshll.u32 %s1837_s24, 4  ;;  %s362_s3 = sshll.u32 %s1838_s30, 4  ;;  %s341_s25 = int_to_ptr.vmem [resolvable:$true] %s340_s25  ;;  %s363_s3 = int_to_ptr.vmem [resolvable:$true] %s362_s3 }
  0x31   : > { %s1716_s14 = scalar_lea.vmem %s341_s25, 2048  ;;  %p1724_p7 = scmp.lt.s32.totalorder %s341_s25, %s341_s25 }
  0x32   : > { %p1717_p6 = scmp.ne.s32.totalorder %s341_s25, %s1716_s14  ;;  %p1725_p8 = scmp.lt.s32.totalorder %s1716_s14, %s1716_s14 }
  0x34   : > { %p1719_p9 = pnand %p1717_p6, %p1655_p13  ;;  %p1726_p11 = por %p1725_p8, %p1724_p7 }
  0x36   : > { %p1720_p4 = pneg %p1719_p9 }
  0x38   : > { %p1727_p0 = pnand %p1726_p11, %p1720_p4 }
  0x3a   : > { %1730 = shalt.err (!%p1727_p0)
}
  0x3b   : > { %1519 = dma.hbm_to_vmem [thread:$0]  (!%p1961_p12), %s2141_s5, 2048, %s341_s25, [#allocation6], %s1835_s16, %s1835_s16, %s1836_s26  }
  0x3c   : > { %s1742_s22 = scalar_lea.vmem %s363_s3, 1024  ;;  %p1750_p6 = scmp.lt.s32.totalorder %s363_s3, %s363_s3 }
  0x3d   : > { %p1743_p1 = scmp.ne.s32.totalorder %s363_s3, %s1742_s22  ;;  %p1751_p9 = scmp.lt.s32.totalorder %s1742_s22, %s1742_s22 }
  0x3f   : > { %p1745_p3 = pnand %p1743_p1, %p1655_p13  ;;  %p1752_p4 = por %p1751_p9, %p1750_p6 }
  0x41   : > { %p1746_p2 = pneg %p1745_p3 }
  0x43   : > { %p1753_p7 = pnand %p1752_p4, %p1746_p2 }
  0x45   : > { %1756 = shalt.err (!%p1753_p7)
}
  0x46   : > { %1522 = dma.hbm_to_vmem [thread:$0]  (!%p1961_p12), %s2145_s9, 1024, %s363_s3, [#allocation9], %s1835_s16, %s1835_s16, %s1836_s26  }
  0x47   : > { %395 = sbr.rel (%p1953_p10) target bundleno = 1574 (0x626), region = 64  ;;  %p2156_p13 = scmp.eq.s32.totalorder (!%p1953_p10), %s1925_s21, 0 }
  0x4c   : > { %1800 = dma.done.wait (%p2156_p13), [#allocation3], 1024   ;;  %p2157_p8 = pmov %p2156_p13 }
  0x4e   : > { %1802 = vsyncadd (%p2157_p8), [#allocation3], 4294966272  ;;  %p2158_p11 = pmov %p2157_p8 }
  0x4f   : > { %p2159_p0 = pmov %p2157_p8 }
  0x50   : > { %1804 = dma.done.wait (%p2158_p11), [#allocation6], 4096  }
  0x51   : > { %1806 = vsyncadd (%p2159_p0), [#allocation6], 4294963200  ;;  %p2160_p1 = pmov %p2159_p0 }
  0x52   : > { %p2161_p12 = pmov %p2159_p0 }
  0x53   : > { %1808 = dma.done.wait (%p2160_p1), [#allocation9], 1024  }
  0x54   : > { %1810 = vsyncadd (%p2161_p12), [#allocation9], 4294966272  ;;  %p449_p10 = scmp.lt.s32.totalorder %s1925_s21, 1  ;;  %v1839_v0 = vmov 0   ;;  %v1840_v1 = vmov 0.0   ;;  %v1581_v3 = vld [vmem:[#allocation2 + $0x38] sm:$0xff]   ;;  %v461_v25 = vlaneseq }
  0x55   : > { %1580 = vset.pattern.permute.xlu0 %v1839_v0  ;;  %1445 = vmatprep.subr.bf16.mxu0 %v1840_v1  ;;  %vm1841_vm0 = vmmov 0   ;;  %v1582_v5 = vld [vmem:[#allocation2 + $0x30] sm:$0xff]   ;;  %v1583_v6 = vld [vmem:[#allocation2 + $0x28] sm:$0xff]   ;;  %v1584_v10 = vld [vmem:[#allocation2 + $0x20] sm:$0xff]   ;;  %v1842_v29 = vmov 1.0|1.0  }
  0x56   : > { %s2025_s3 = scalar_select %p449_p10, %s1925_s21, 1  ;;  %722 = vmatprep.mubr.bf16.mxu1 %v1839_v0  ;;  %1461 = vmatprep.mubr.msk.bf16.mxu0 %vm1841_vm0, %v1840_v1  ;;  %v1589_v7 = vld [vmem:[#allocation5 + $0x74] ss:$8 sps:$4 sm:$0xff]   ;;  %v1591_v8 = vld [vmem:[#allocation5 + $0x70] ss:$8 sps:$4 sm:$0xff]   ;;  %v1587_v19 = vld [vmem:[#allocation2 + $0x8] sm:$0xff]  }
  0x57   : > { %1446 = vmatpush3.bf16.msra.mxu0 %v1581_v3  ;;  %v1592_v9 = vld [vmem:[#allocation5 + $0x64] ss:$8 sps:$4 sm:$0xff]   ;;  %690 = vmatprep.subr.bf16.mxu1 %v1589_v7  ;;  %v1594_v11 = vld [vmem:[#allocation5 + $0x60] ss:$8 sps:$4 sm:$0xff]   ;;  %v1595_v12 = vld [vmem:[#allocation5 + $0x54] ss:$8 sps:$4 sm:$0xff]  }
  0x58   : > { %s1401_s26 = sshll.u32 %s2025_s3, 4  ;;  %1447 = vmatprep.subr.bf16.mxu0 %v1840_v1  ;;  %691 = vmatpush1.bf16.msra.mxu1 %v1591_v8  ;;  %v1585_v13 = vld [vmem:[#allocation2 + $0x18] sm:$0xff]   ;;  %v1586_v15 = vld [vmem:[#allocation2 + $0x10] sm:$0xff]   ;;  %v1598_v16 = vld [vmem:[#allocation5 + $0x44] ss:$8 sps:$4 sm:$0xff]   ;;  %v2040_v27 = vand.u32 127, %v461_v25  ;;  %s456_s22 = scalar_lea.vmem %s2137_s1, %s2025_s3 }
  0x59   : > { %s453_s16 = scalar_lea.vmem %s2136_s0, %s1401_s26  ;;  %692 = vmatprep.subr.bf16.mxu1 %v1592_v9  ;;  %v1597_v14 = vld [vmem:[#allocation5 + $0x50] ss:$8 sps:$4 sm:$0xff]   ;;  %v1600_v17 = vld [vmem:[#allocation5 + $0x40] ss:$8 sps:$4 sm:$0xff]   ;;  %v1601_v18 = vld [vmem:[#allocation5 + $0x34] ss:$8 sps:$4 sm:$0xff]  }
  0x5a   : > { %v458_v2 = vld [vmem:[%s453_s16] sm:$0xff]  ;;  %v459_v4 = vld [vmem:[%s453_s16 + $0x8] sm:$0xff]  ;;  %v1603_v20 = vld [vmem:[#allocation5 + $0x30] ss:$8 sps:$4 sm:$0xff]   ;;  %v601_v54 = vshrl.u32 %v461_v25, 7  ;;  %vm1003_vm5 = vcmask 130048  }
  0x5b   : > { %464 = vperm.xlu0 %1580, %v458_v2   ;;  %1448 = vmatpush3.bf16.msra.mxu0 %v1582_v5  ;;  %v1604_v21 = vld [vmem:[#allocation5 + $0x24] ss:$8 sps:$4 sm:$0xff]   ;;  %v1606_v23 = vld [vmem:[#allocation5 + $0x20] ss:$8 sps:$4 sm:$0xff]   ;;  %v1607_v24 = vld [vmem:[#allocation5 + $0x14] ss:$8 sps:$4 sm:$0xff]  }
  0x5c   : > { %1449 = vmatprep.subr.bf16.mxu0 %v1840_v1  ;;  %693 = vmatpush1.bf16.msra.mxu1 %v1594_v11  ;;  %v1588_v22 = vld [vmem:[#allocation2] sm:$0xff]   ;;  %v1609_v30 = vld [vmem:[#allocation5 + $0x10] ss:$8 sps:$4 sm:$0xff]   ;;  %v1617_v42 = vld [vmem:[#allocation7 + $0x68] sm:$0xff]   ;;  %v602_v55 = vsub.s32 0, %v601_v54  ;;  %v606_v57 = vsub.s32 1, %v601_v54 }
  0x5d   : > { %694 = vmatprep.subr.bf16.mxu1 %v1595_v12  ;;  %v1610_v31 = vld [vmem:[#allocation5 + $0x4] ss:$8 sps:$4 sm:$0xff]   ;;  %v1612_v32 = vld [vmem:[#allocation5] ss:$8 sps:$4 sm:$0xff]   ;;  %v1613_v38 = vld [vmem:[#allocation7 + $0x78] sm:$0xff]   ;;  %s447_s16 = sand.u32 1, %s1821_s18  }
  0x5e   : > { %v1614_v39 = vld [vmem:[#allocation7 + $0x38] sm:$0xff]   ;;  %v1615_v40 = vld [vmem:[#allocation7 + $0x70] sm:$0xff]   ;;  %v1618_v43 = vld [vmem:[#allocation7 + $0x28] sm:$0xff]   ;;  %s1398_s15 = sshll.u32 %s1925_s21, 4  ;;  %s448_s12 = scalar_lea.vmem [#allocation10], %s447_s16 }
  0x5f   : > { %467 = vperm.xlu0 %1580, %v459_v4   ;;  %1450 = vmatpush3.bf16.msra.mxu0 %v1583_v6  ;;  %v1616_v41 = vld [vmem:[#allocation7 + $0x30] sm:$0xff]   ;;  %v1619_v44 = vld [vmem:[#allocation7 + $0x60] sm:$0xff]   ;;  %v1621_v46 = vld [vmem:[#allocation7 + $0x58] sm:$0xff]   ;;  %s2095_s3 = scalar_lea.hbm %s2147_s11, %s1398_s15  ;;  %s1209_s26 = scalar_lea.sflag [#allocation4], %s447_s16 }
  0x60   : > { %1451 = vmatprep.subr.bf16.mxu0 %v1840_v1  ;;  %695 = vmatpush1.bf16.msra.mxu1 %v1597_v14  ;;  %v1620_v45 = vld [vmem:[#allocation7 + $0x20] sm:$0xff]   ;;  %v1622_v47 = vld [vmem:[#allocation7 + $0x18] sm:$0xff]   ;;  %v1623_v48 = vld [vmem:[#allocation7 + $0x50] sm:$0xff]   ;;  %s1843_s21 = smov [#allocation10]  }
  0x61   : > { %696 = vmatprep.subr.bf16.mxu1 %v1598_v16  ;;  %v1624_v49 = vld [vmem:[#allocation7 + $0x10] sm:$0xff]   ;;  %v1625_v50 = vld [vmem:[#allocation7 + $0x48] sm:$0xff]   ;;  %v1627_v52 = vld [vmem:[#allocation7 + $0x40] sm:$0xff]   ;;  %s1761_s13 = sshll.u32 %s1843_s21, 4  ;;  %s1762_s13 = int_to_ptr.vmem [resolvable:$false] %s1761_s13 }
  0x62   : > { %v1626_v51 = vld [vmem:[#allocation7 + $0x8] sm:$0xff]   ;;  %v1628_v53 = vld [vmem:[#allocation7] sm:$0xff]   ;;  %s1763_s25 = scalar_lea.vmem %s1762_s13, 32 }
  0x63   : > { %1452 = vmatpush3.bf16.msra.mxu0 %v1584_v10  ;;  %v598_v56 = vld [vmem:[%s2140_s4] sm:$0x3] }
  0x64   : > { %1453 = vmatprep.subr.bf16.mxu0 %v1840_v1  ;;  %697 = vmatpush1.bf16.msra.mxu1 %v1600_v17  ;;  %v603_v58 = vrot.slane %v598_v56, %v602_v55  ;;  %v607_v59 = vrot.slane %v598_v56, %v606_v57 }
  0x65   : > { %698 = vmatprep.subr.bf16.mxu1 %v1601_v18 }
  0x67   : > { %1454 = vmatpush3.bf16.msra.mxu0 %v1585_v13 }
  0x68   : > { %1455 = vmatprep.subr.bf16.mxu0 %v1840_v1  ;;  %699 = vmatpush1.bf16.msra.mxu1 %v1603_v20 }
  0x69   : > { %700 = vmatprep.subr.bf16.mxu1 %v1604_v21 }
  0x6b   : > { %1456 = vmatpush3.bf16.msra.mxu0 %v1586_v15 }
  0x6c   : > { %1457 = vmatprep.subr.bf16.mxu0 %v1840_v1  ;;  %701 = vmatpush1.bf16.msra.mxu1 %v1606_v23 }
  0x6d   : > { %702 = vmatprep.subr.bf16.mxu1 %v1607_v24 }
  0x6f   : > { %1458 = vmatpush3.bf16.msra.mxu0 %v1587_v19 }
  0x70   : > { %1459 = vmatprep.subr.bf16.mxu0 %v1840_v1  ;;  %703 = vmatpush1.bf16.msra.mxu1 %v1609_v30 }
  0x71   : > { %704 = vmatprep.subr.bf16.mxu1 %v1610_v31 }
  0x73   : > { %1460 = vmatpush3.bf16.msra.mxu0 %v1588_v22 }
  0x74   : > { %705 = vmatpush1.bf16.msra.mxu1 %v1612_v32  ;;  %1411 = vmatprep.subr.bf16.mxu0 %v1613_v38 }
  0x75   : > { %1472 = vmatprep.subr.bf16.mxu1 %v1840_v1 }
  0xd6   : > { %v465_v26 = vpop.permute.xlu0 %464 }
  0xd7   : > { %vm469_vm1 = vcmp.eq.s32.totalorder %v465_v26, %v2040_v27 }
  0xda   : > { %v468_v28 = vpop.permute.xlu0 %467 }
  0xdb   : > { %vm470_vm2 = vcmp.eq.s32.totalorder %v468_v28, %v2040_v27 }
  0xdc   : > { %vm1350_vm3 = vmpackc.low %vm470_vm2, %vm469_vm1 }
  0xdd   : > { %1462 = vmatmul.mubr.msk.bf16.vlgmr.msra.gmra.mxu0 %vm1350_vm3, %v1842_v29 }
  0xde   : > { %1412 = vmatpush3.bf16.msra.mxu0 %v1614_v39 }
  0xdf   : > { %1413 = vmatprep.subr.bf16.mxu0 %v1615_v40 }
  0xe2   : > { %1414 = vmatpush3.bf16.msra.mxu0 %v1616_v41 }
  0xe3   : > { %1415 = vmatprep.subr.bf16.mxu0 %v1617_v42 }
  0xe6   : > { %1416 = vmatpush3.bf16.msra.mxu0 %v1618_v43 }
  0xe7   : > { %1417 = vmatprep.subr.bf16.mxu0 %v1619_v44 }
  0xea   : > { %1418 = vmatpush3.bf16.msra.mxu0 %v1620_v45 }
  0xeb   : > { %1419 = vmatprep.subr.bf16.mxu0 %v1621_v46  ;;  %v992_v46 = vshrl.u32 %v2040_v27, 1 }
  0xed   : > { %vm993_vm4 = vcmp.eq.s32.totalorder %v992_v46, %v601_v54 }
  0xee   : > { %1420 = vmatpush3.bf16.msra.mxu0 %v1622_v47  ;;  %v1388_v47 = vld [vmem:[%s456_s22] ss:$0 sm:$0xff]  ;;  %s1221_s22 = sshll.u32 %s448_s12, 4  ;;  %s2097_s22 = int_to_ptr.vmem [resolvable:$true] %s1221_s22 }
  0xef   : > { %1421 = vmatprep.subr.bf16.mxu0 %v1623_v48  ;;  %v1387_v48 = vsel %vm993_vm4, 1.0, %v1840_v1  ;;  %s1757_s29 = scalar_lea.vmem %s2097_s22, 16  ;;  %p1764_p9 = scmp.lt.s32.totalorder %s2097_s22, %s1762_s13 }
  0xf0   : > { %p1758_p3 = scmp.ne.s32.totalorder %s2097_s22, %s1757_s29  ;;  %p1765_p4 = scmp.lt.s32.totalorder %s1763_s25, %s1757_s29 }
  0xf2   : > { %1422 = vmatpush3.bf16.msra.mxu0 %v1624_v49  ;;  %v1002_v49 = vmul.f32 %v1388_v47, %v1387_v48  ;;  %p1759_p2 = pnand %p1758_p3, %p1942_p5  ;;  %p1766_p7 = por %p1765_p4, %p1764_p9 }
  0xf3   : > { %1423 = vmatprep.subr.bf16.mxu0 %v1625_v50 }
  0xf4   : > { %v1004_v50 = vsel %vm1003_vm5, %v1002_v49, 0.0  ;;  %p1760_p6 = pneg %p1759_p2 }
  0xf5   : > { %1005 = vadd.xlane.f32.xlu0 %v1004_v50 }
  0xf6   : > { %1424 = vmatpush3.bf16.msra.mxu0 %v1626_v51  ;;  %p1767_p13 = pnand %p1766_p7, %p1760_p6 }
  0xf7   : > { %1425 = vmatprep.subr.bf16.mxu0 %v1627_v52 }
  0xfa   : > { %1426 = vmatpush3.bf16.msra.mxu0 %v1628_v53 }
  0xfb   : > { %1465 = vmatprep.subr.mxu0 %v1840_v1 }
 0x19d   : > { %v2045_v33 = vpop.f32.mrf.mxu0 }
 0x19f   : > { %v1463_v34 = vpop.f32.mrf.mxu0 }
 0x1a1   : > { %v2047_v35 = vpop.f32.mrf.mxu0 }
 0x1a2   : > { %v581_v36 = vpack.c.bf16 %v2047_v35, %v2045_v33 }
 0x1a3   : > { %v1464_v37 = vpop.f32.mrf.mxu0 }
 0x1a4   : > { %723 = vmatmul.mubr.bf16.vlgmr.msra.gmra.mxu1 %v581_v36 }
 0x1a5   : > { %1488 = vmatprep.mubr.msk.bf16.mxu1 %vm1841_vm0, %v1840_v1 }
 0x264   : > { %v724_v60 = vpop.f32.mrf.mxu1 }
 0x265   : > { %v725_v61 = vadd.f32 %v724_v60, %v603_v58 }
 0x266   : > { %v726_v62 = vpop.f32.mrf.mxu1 }
 0x267   : > { %v733_v63 = vmul.f32 %v725_v61, %v725_v61  ;;  %v727_v0 = vadd.f32 %v726_v62, %v607_v59 }
 0x268   : > { %v728_v2 = vpop.f32.mrf.mxu1 }
 0x269   : > { %v737_v3 = vmul.f32 %v733_v63, %v725_v61  ;;  %v734_v4 = vmul.f32 %v727_v0, %v727_v0  ;;  %v729_v5 = vadd.f32 %v728_v2, %v603_v58  ;;  %v1368_v58 = vld [vmem:[%s2142_s6] ss:$0 sm:$0xff] }
 0x26a   : > { %v730_v6 = vpop.f32.mrf.mxu1 }
 0x26b   : > { %v741_v7 = vmul.f32 0.044715, %v737_v3  ;;  %v738_v8 = vmul.f32 %v734_v4, %v727_v0  ;;  %v735_v9 = vmul.f32 %v729_v5, %v729_v5  ;;  %v731_v10 = vadd.f32 %v730_v6, %v607_v59  ;;  %v1629_v6 = vld [vmem:[#allocation8 + $0x38] sm:$0xff]  }
 0x26c   : > { %1473 = vmatpush3.bf16.msra.mxu1 %v1629_v6 }
 0x26d   : > { %v745_v11 = vadd.f32 %v741_v7, %v725_v61  ;;  %v742_v12 = vmul.f32 0.044715, %v738_v8  ;;  %v739_v13 = vmul.f32 %v735_v9, %v729_v5  ;;  %v736_v14 = vmul.f32 %v731_v10, %v731_v10  ;;  %v1630_v7 = vld [vmem:[#allocation8 + $0x30] sm:$0xff]   ;;  %1474 = vmatprep.subr.bf16.mxu1 %v1840_v1  ;;  %v1633_v8 = vld [vmem:[#allocation8 + $0x18] sm:$0xff]  }
 0x26e   : > { %v1634_v9 = vld [vmem:[#allocation8 + $0x10] sm:$0xff]  }
 0x26f   : > { %v749_v15 = vmul.f32 0.7978846, %v745_v11  ;;  %v746_v16 = vadd.f32 %v742_v12, %v727_v0  ;;  %v743_v17 = vmul.f32 0.044715, %v739_v13  ;;  %v740_v18 = vmul.f32 %v736_v14, %v731_v10  ;;  %v1006_v11 = vpop.xlane.xlu0 %1005 }
 0x270   : > { %1475 = vmatpush3.bf16.msra.mxu1 %v1630_v7  ;;  %v1007_v12 = vmax.f32 %v1006_v11, 1.0  ;;  %v1009_v13 = vmin.f32 %v1006_v11, 1.0 }
 0x271   : > { %v750_v19 = vmul.f32 0.7978846, %v746_v16  ;;  %v747_v20 = vadd.f32 %v743_v17, %v729_v5  ;;  %v744_v21 = vmul.f32 0.044715, %v740_v18  ;;  %1637 = vtanh.f32 %v749_v15  ;;  %1476 = vmatprep.subr.bf16.mxu1 %v1840_v1 }
 0x272   : > { %v1019_v14 = vrot.slane %v1009_v13, 4 }
 0x273   : > { %1639 = vtanh.f32 %v750_v19  ;;  %v751_v22 = vmul.f32 0.7978846, %v747_v20  ;;  %v748_v23 = vadd.f32 %v744_v21, %v731_v10 }
 0x274   : > { %v1020_v15 = vadd.f32 %v1019_v14, %v1009_v13 }
 0x275   : > { %1641 = vtanh.f32 %v751_v22  ;;  %v752_v24 = vmul.f32 0.7978846, %v748_v23 }
 0x276   : > { %v1021_v17 = vrot.slane %v1020_v15, 2 }
 0x277   : > { %1643 = vtanh.f32 %v752_v24 }
 0x278   : > { %1645 = vrcp.f32 %v1007_v12  ;;  %v1022_v19 = vadd.f32 %v1021_v17, %v1020_v15 }
 0x27a   : > { %v1023_v21 = vrot.slane %v1022_v19, 1 }
 0x27e   : > { %v1638_v25 = vpop.eup %1637 }
 0x27f   : > { %v757_v30 = vadd.f32 1.0, %v1638_v25 }
 0x280   : > { %v1640_v26 = vpop.eup %1639 }
 0x281   : > { %v758_v28 = vadd.f32 1.0, %v1640_v26  ;;  %v761_v38 = vmul.f32 0.5, %v757_v30 }
 0x282   : > { %v1642_v29 = vpop.eup %1641 }
 0x283   : > { %v759_v31 = vadd.f32 1.0, %v1642_v29  ;;  %v762_v37 = vmul.f32 0.5, %v758_v28  ;;  %v765_v43 = vmul.f32 %v761_v38, %v725_v61  ;;  %v1024_v28 = vadd.f32 %v1023_v21, %v1022_v19 }
 0x284   : > { %v1644_v32 = vpop.eup %1643 }
 0x285   : > { %v763_v34 = vmul.f32 0.5, %v759_v31  ;;  %v760_v36 = vadd.f32 1.0, %v1644_v32  ;;  %v766_v41 = vmul.f32 %v762_v37, %v727_v0  ;;  %v1646_v16 = vpop.eup %1645 }
 0x286   : > { %v1010_v18 = vmul.f32 %v1646_v16, %v1009_v13 }
 0x287   : > { %v764_v39 = vmul.f32 0.5, %v760_v36  ;;  %v767_v40 = vmul.f32 %v763_v34, %v729_v5  ;;  %v1025_v34 = vmax.f32 %v1024_v28, 1.0 }
 0x288   : > { %v1011_v20 = vmul.f32 %v1010_v18, %v1002_v49 }
 0x289   : > { %v768_v42 = vmul.f32 %v764_v39, %v731_v10  ;;  %v769_v45 = vpack.c.bf16 %v767_v40, %v765_v43  ;;  %v1635_v10 = vld [vmem:[#allocation8 + $0x8] sm:$0xff]   ;;  %v1385_v39 = vld [vmem:[%s2143_s7] ss:$0 sm:$0xff] }
 0x28a   : > { %v1012_v23 = vsel %vm1003_vm5, %v1011_v20, 0.0 }
 0x28b   : > { %v770_v44 = vpack.c.bf16 %v768_v42, %v766_v41  ;;  %v1013_v26 = vrot.slane %v1012_v23, 4  ;;  %v1386_v42 = vld [vmem:[%s2144_s8] ss:$0 sm:$0xff] }
 0x28d   : > { %938 = vmatprep.mubr.bf16.mxu0 %v770_v44  ;;  %v1014_v32 = vadd.f32 %v1013_v26, %v1012_v23 }
 0x28e   : > { %939 = vmatmul.mubr.bf16.vlgmr.msra.gmra.mxu0 %v769_v45 }
 0x28f   : > { %1469 = vmatprep.mubr.msk.f32.mxu0 %vm1841_vm0, %v1840_v1  ;;  %v1015_v36 = vrot.slane %v1014_v32, 2 }
 0x291   : > { %v1016_v37 = vadd.f32 %v1015_v36, %v1014_v32 }
 0x293   : > { %v1017_v41 = vrot.slane %v1016_v37, 1 }
 0x295   : > { %v1018_v47 = vadd.f32 %v1017_v41, %v1016_v37 }
 0x34e   : > { %v1427_v51 = vpop.f32.mrf.mxu0 }
 0x350   : > { %v1428_v52 = vpop.f32.mrf.mxu0 }
 0x351   : > { %v1429_v56 = vadd.f32 %v1428_v52, %v1427_v51  ;;  %v1636_v52 = vld [vmem:[#allocation8] sm:$0xff]  }
 0x352   : > { %v1430_v53 = vpop.f32.mrf.mxu0 }
 0x353   : > { %v941_v59 = vadd.f32 %v1429_v56, %v1368_v58 }
 0x354   : > { %v1431_v55 = vpop.f32.mrf.mxu0 }
 0x355   : > { %v1432_v57 = vadd.f32 %v1431_v55, %v1430_v53  ;;  %v947_v60 = vadd.f32 %v941_v59, %v2045_v33  ;;  %v1632_v33 = vld [vmem:[#allocation8 + $0x20] sm:$0xff]  }
 0x357   : > { %v944_v27 = vadd.f32 %v1432_v57, %v1368_v58  ;;  %v1118_v57 = vld [vmem:[%s2146_s10] sm:$0x1] }
 0x359   : > { %v948_v54 = vadd.f32 %v944_v27, %v2047_v35  ;;  %v1631_v35 = vld [vmem:[#allocation8 + $0x28] sm:$0xff]  }
 0x35a   : > { %1477 = vmatpush3.bf16.msra.mxu1 %v1631_v35 }
 0x35b   : > { %951 = vadd.xlane.f32.xlu1 %v948_v54  ;;  %1478 = vmatprep.subr.bf16.mxu1 %v1840_v1 }
 0x35e   : > { %1479 = vmatpush3.bf16.msra.mxu1 %v1632_v33 }
 0x35f   : > { %949 = vadd.xlane.f32.xlu1 %v947_v60  ;;  %1480 = vmatprep.subr.bf16.mxu1 %v1840_v1 }
 0x362   : > { %1481 = vmatpush3.bf16.msra.mxu1 %v1633_v8 }
 0x363   : > { %1482 = vmatprep.subr.bf16.mxu1 %v1840_v1 }
 0x366   : > { %1483 = vmatpush3.bf16.msra.mxu1 %v1634_v9 }
 0x367   : > { %1484 = vmatprep.subr.bf16.mxu1 %v1840_v1 }
 0x36a   : > { %1485 = vmatpush3.bf16.msra.mxu1 %v1635_v10 }
 0x36b   : > { %1486 = vmatprep.subr.bf16.mxu1 %v1840_v1 }
 0x36e   : > { %1487 = vmatpush3.bf16.msra.mxu1 %v1636_v52 }
 0x3e4   : > { %v952_v61 = vpop.xlane.xlu1 %951 }
 0x3e5   : > { %v955_v62 = vmul.f32 0.0078125, %v952_v61 }
 0x3e7   : > { %v957_v63 = vsub.f32 %v948_v54, %v955_v62 }
 0x3e8   : > { %v950_v0 = vpop.xlane.xlu1 %949 }
 0x3e9   : > { %v954_v2 = vmul.f32 0.0078125, %v950_v0  ;;  %v959_v3 = vmul.f32 %v957_v63, %v957_v63 }
 0x3eb   : > { %v956_v4 = vsub.f32 %v947_v60, %v954_v2  ;;  %962 = vadd.xlane.f32.xlu1 %v959_v3 }
 0x3ed   : > { %v958_v5 = vmul.f32 %v956_v4, %v956_v4 }
 0x3ef   : > { %960 = vadd.xlane.f32.xlu1 %v958_v5 }
 0x474   : > { %v963_v22 = vpop.xlane.xlu1 %962 }
 0x475   : > { %v965_v24 = vmul.f32 0.0078125, %v963_v22 }
 0x477   : > { %v967_v25 = vadd.f32 1e-05, %v965_v24 }
 0x478   : > { %v961_v29 = vpop.xlane.xlu1 %960 }
 0x479   : > { %1647 = vrsqrt.f32 %v967_v25  ;;  %v964_v30 = vmul.f32 0.0078125, %v961_v29 }
 0x47b   : > { %v966_v31 = vadd.f32 1e-05, %v964_v30 }
 0x47d   : > { %1649 = vrsqrt.f32 %v966_v31 }
 0x47e   : > { %1651 = vrcp.f32 %v1025_v34 }
 0x486   : > { %v1648_v38 = vpop.eup %1647 }
 0x487   : > { %v971_v40 = vmul.f32 %v1648_v38, %v957_v63 }
 0x489   : > { %v980_v43 = vmul.f32 %v1385_v39, %v971_v40 }
 0x48a   : > { %v1650_v44 = vpop.eup %1649 }
 0x48b   : > { %v989_v45 = vadd.f32 %v1386_v42, %v980_v43  ;;  %v970_v46 = vmul.f32 %v1650_v44, %v956_v4  ;;  %v1652_v48 = vpop.eup %1651 }
 0x48c   : > { %v1027_v51 = vmul.f32 %v1652_v48, %v1018_v47 }
 0x48d   : > { %1466 = vmatpush3.msra.mxu0 %v989_v45  ;;  %v979_v49 = vmul.f32 %v1385_v39, %v970_v46 }
 0x48e   : > { %1467 = vmatprep.subr.mxu0 %v1840_v1 }
 0x48f   : > { %v988_v50 = vadd.f32 %v1386_v42, %v979_v49 }
 0x491   : > { %1468 = vmatpush3.msra.mxu0 %v988_v50 }
 0x492   : > { %1470 = vmatmul.mubr.msk.f32.vlgmr.msra.gmra.mxu0 %vm1003_vm5, %v1027_v51 }
 0x552   : > { %v1097_v53 = vpop.f32.mrf.mxu0 }
 0x553   : > { %v1101_v55 = vpack.c.bf16 %v1097_v53, %v1097_v53 }
 0x554   : > { %v1471_v56 = vpop.f32.mrf.mxu0 }
 0x555   : > { %1489 = vmatmul.mubr.bf16.vlgmr.msra.gmra.mxu1 %v1101_v55 }
 0x615   : > { %v1201_v1 = vpop.f32.mrf.mxu1 }
 0x616   : > { %v1202_v58 = vadd.f32 %v1201_v1, %v1118_v57 }
 0x617   : > { %v1490_v27 = vpop.f32.mrf.mxu1 }
 0x618   : > { %1207 = vst [vmem:[%s448_s12] sm:$0x1] %v1202_v58 }
 0x619   : > { %v1204_v59 = vpop.f32.mrf.mxu1 }
 0x61a   : > { %1770 = shalt.err (!%p1767_p13)
}
 0x61b   : > { %s1771_s14 = scalar_lea.hbm %s2095_s3, 16  ;;  %s1775_s12 = scalar_lea.hbm %s2147_s11, 32 }
 0x61c   : > { %p1772_p8 = scmp.ne.s32.totalorder %s2095_s3, %s1771_s14  ;;  %p1776_p1 = scmp.lt.s32.totalorder %s2095_s3, %s2147_s11 }
 0x61d   : > { %p1777_p12 = scmp.lt.s32.totalorder %s1775_s12, %s1771_s14 }
 0x61e   : > { %p1773_p11 = pnand %p1772_p8, %p1942_p5 }
 0x61f   : > { %p1778_p10 = por %p1777_p12, %p1776_p1 }
 0x620   : > { %p1774_p0 = pneg %p1773_p11 }
 0x622   : > { %p1779_p3 = pnand %p1778_p10, %p1774_p0 }
 0x624   : > { %1782 = shalt.err (!%p1779_p3)
}
 0x625   : > { %1508 = dma.vmem_to_hbm [thread:$0]  (%p1942_p5), %s2097_s22, 16, %s2095_s3, %s1209_s26   ;;  %v1491_v54 = vpop.f32.mrf.mxu1 }
 0x626 PF: > { %p1535_p2 = scmp.ge.s32.totalorder %s1829_s20, 2  ;;  %s1233_s29 = sand.u32 1, %s1817_s17  }
 0x627   : > { %p2162_p6 = scmp.ne.s32.totalorder %s2152_s28, 0  ;;  %s1234_s21 = scalar_lea.sflag [#allocation4], %s1233_s29 }
 0x629   : > { %p1524_p9 = pnand %p1535_p2, %p2162_p6 }
 0x62b   : > { %p1525_p4 = pneg %p1524_p9 }
 0x62d   : > { %1812 = dma.done.wait (%p1525_p4), %s1234_s21, 16  }
 0x62e   : > { %1814 = vsyncadd (%p1525_p4), %s1234_s21, 4294967280  ;;  %s2163_s27 = sld [smem:[#allocation15_spill]]  ;;  %p24_p7 = scmp.ge.s32.totalorder %s1929_s23, 4  }
 0x62f   : > { %s2164_s17 = smov %s1821_s18  ;;  %s2165_s18 = smov %s1825_s19 }
 0x630   : > { %s2167_s20 = smov %s1929_s23  ;;  %26 = sbr.rel (!%p24_p7) target bundleno = 8 (0x8), region = 119 }
 0x634   : > { %s2166_s19 = smov %s2163_s27 }
 0x635   :  { %1238 = vsyncpa [#allocation3], 1 }
 0x636   :  { %1240 = vsyncpa [#allocation3 + $0x1], 1 }
 0x637   :  { %1241 = vsyncpa [#allocation6], 1 }
 0x638   :  { %1242 = vsyncpa [#allocation9], 1 }
 0x639   :  { %1243 = vsyncpa [#allocation4], 1 }
 0x63a   :  { %1245 = vsyncpa [#allocation4 + $0x1], 1 }

</bundles_post_ra>
